<compile_context>
chip_gen: v7x
topology: tpu7x:2x2x1
jax: 0.10.0
libtpu: 0.0.40
codegen_flags: <defaults>
</compile_context>

<pallas_src>
import functools

import jax
import jax.numpy as jnp
from jax.experimental import pallas as pl
from jax.experimental.pallas import tpu as pltpu


def _round_up(x, m):
  return ((x + m - 1) // m) * m


# ----------------------------------------------------------------------------
# Fused Pallas kernel: one grid step == one GNN layer; the last step also does
# global_add_pool + the 2-layer MLP head on data already resident in VMEM.
# ----------------------------------------------------------------------------
def fused_gnn_kernel(a_ref, x0_ref, eagg_ref, w_ref, b_ref, gamma_ref, beta_ref,
                     p_ref, w1_ref, b1_ref, w2_ref, b2_ref, out_ref, x_scr,
                     *, add_residual, inv_n):
  layer = pl.program_id(0)

  @pl.when(layer == 0)
  def _():
    x_scr[...] = x0_ref[...]

  x = x_scr[...]

  # Neighbor aggregation as a dense matmul on the MXU (bf16 x bf16 -> f32 acc),
  # plus per-destination edge-attr aggregate and the self term.
  agg = jnp.dot(a_ref[...], x.astype(jnp.bfloat16),
                preferred_element_type=jnp.float32)
  m = agg + eagg_ref[0] + x

  # Linear part of the conv.
  z = jnp.dot(m, w_ref[0], preferred_element_type=jnp.float32) + b_ref[0]

  # BatchNorm1d (training-mode batch statistics, biased variance, eps=1e-5) in
  # a single pass via sum / sum-of-squares; rsqrt lands on the EUP slot.
  s1 = jnp.sum(z, axis=0, keepdims=True)
  s2 = jnp.sum(z * z, axis=0, keepdims=True)
  mean = s1 * inv_n
  var = jnp.maximum(s2 * inv_n - mean * mean, 0.0)
  zn = (z - mean) * jax.lax.rsqrt(var + 1e-5)
  h = jnp.maximum(gamma_ref[0] * zn + beta_ref[0], 0.0)

  # Residual handled in-kernel (free VPU add on data already in vregs).
  x_scr[...] = h + x if add_residual else h

  @pl.when(layer == pl.num_programs(0) - 1)
  def _():
    # global_add_pool as a one-hot matmul, then Linear-ReLU-Linear head.
    pooled = jnp.dot(p_ref[...].astype(jnp.float32), x_scr[...],
                     preferred_element_type=jnp.float32)
    hid = jnp.dot(pooled, w1_ref[...],
                  preferred_element_type=jnp.float32) + b1_ref[...]
    hid = jnp.maximum(hid, 0.0)
    out_ref[...] = jnp.dot(hid, w2_ref[...],
                           preferred_element_type=jnp.float32) + b2_ref[...]


def fused_gnn(a, x0, eaggs, ws, bs, gammas, betas, p, w1, b1, w2, b2,
              *, add_residual):
  num_layers, n, dpad = eaggs.shape
  g = p.shape[0]
  hpad = w1.shape[1]
  tpad = w2.shape[1]

  # Advisory cost estimate for XLA's scheduler.
  flops = num_layers * (2 * n * n * dpad + 2 * n * dpad * dpad + 8 * n * dpad)
  flops += 2 * g * n * dpad + 2 * g * dpad * hpad + 2 * g * hpad * tpad
  bytes_accessed = sum(int(t.size) * t.dtype.itemsize for t in
                       (a, x0, eaggs, ws, bs, gammas, betas, p, w1, b1, w2, b2))
  bytes_accessed += g * tpad * 4

  kernel = functools.partial(fused_gnn_kernel,
                             add_residual=add_residual,
                             inv_n=1.0 / n)

  return pl.pallas_call(
      kernel,
      out_shape=jax.ShapeDtypeStruct((g, tpad), jnp.float32),
      grid_spec=pltpu.PrefetchScalarGridSpec(
          num_scalar_prefetch=0,
          grid=(num_layers,),
          in_specs=[
              # Loaded once, resident across all layers (constant block index).
              pl.BlockSpec((n, n), lambda l: (0, 0)),           # A  (bf16)
              pl.BlockSpec((n, dpad), lambda l: (0, 0)),        # x0 (f32)
              # Per-layer tensors, pipelined along the layer axis.
              pl.BlockSpec((1, n, dpad), lambda l: (l, 0, 0)),  # eagg
              pl.BlockSpec((1, dpad, dpad), lambda l: (l, 0, 0)),  # W
              pl.BlockSpec((1, 1, dpad), lambda l: (l, 0, 0)),  # b
              pl.BlockSpec((1, 1, dpad), lambda l: (l, 0, 0)),  # gamma
              pl.BlockSpec((1, 1, dpad), lambda l: (l, 0, 0)),  # beta
              # Pool + head parameters, loaded once.
              pl.BlockSpec((g, n), lambda l: (0, 0)),           # P (bf16)
              pl.BlockSpec((dpad, hpad), lambda l: (0, 0)),     # w1
              pl.BlockSpec((1, hpad), lambda l: (0, 0)),        # b1
              pl.BlockSpec((hpad, tpad), lambda l: (0, 0)),     # w2
              pl.BlockSpec((1, tpad), lambda l: (0, 0)),        # b2
          ],
          out_specs=pl.BlockSpec((g, tpad), lambda l: (0, 0)),
          scratch_shapes=[pltpu.VMEM((n, dpad), jnp.float32)],  # activations
      ),
      compiler_params=pltpu.CompilerParams(
          dimension_semantics=("arbitrary",),   # sequential carry across layers
          vmem_limit_bytes=32 * 1024 * 1024),
      cost_estimate=pl.CostEstimate(
          flops=int(flops),
          transcendentals=int(num_layers * dpad),
          bytes_accessed=int(bytes_accessed)),
  )(a, x0, eaggs, ws, bs, gammas, betas, p, w1, b1, w2, b2)


# ----------------------------------------------------------------------------
# Full forward pass (glue in plain JAX, everything else in the fused kernel)
# ----------------------------------------------------------------------------
def gnn_forward(params, x_idx, edge_index, edge_attr, batch, num_graphs,
                add_residual=False):
  n = x_idx.shape[0]
  emb_dim = params["node_emb"].shape[1]
  num_layers = len(params["layers"])
  d_in = params["layers"][0]["w"].shape[0]
  num_tasks = params["w2"].shape[1]

  dpad = _round_up(max(d_in, emb_dim), 128)
  hpad = _round_up(params["w1"].shape[1], 128)
  tpad = _round_up(num_tasks, 128)

  # feature_encoder: nn.Embedding(21, emb_dim) on x.squeeze()
  # TODO(synk): embedding gather has no clean Pallas equivalent; done in glue.
  x0 = jnp.take(params["node_emb"], x_idx.squeeze(-1), axis=0)
  x0 = jnp.pad(x0, ((0, 0), (0, dpad - emb_dim)))

  src, dst = edge_index[0], edge_index[1]
  # Dense adjacency (messages flow src -> dst): A[dst, src] += 1; stored bf16
  # (entries are exact small integers).
  a = jnp.zeros((n, n), jnp.float32).at[dst, src].add(1.0).astype(jnp.bfloat16)

  # All layers' per-destination edge-attr aggregation in ONE scatter-add.
  edge_tables = jnp.stack([lyr["edge_emb"] for lyr in params["layers"]])
  edge_msgs = edge_tables[:, edge_attr, :]                       # (L, E, d_in)
  eaggs = jnp.zeros((num_layers, n, edge_tables.shape[-1]), jnp.float32)
  eaggs = eaggs.at[:, dst, :].add(edge_msgs)
  eaggs = jnp.pad(eaggs, ((0, 0), (0, 0), (0, dpad - edge_tables.shape[-1])))

  # Stack + zero-pad per-layer parameters to lane-dense 128-wide channels.
  ws = jnp.stack([jnp.pad(lyr["w"], ((0, dpad - lyr["w"].shape[0]),
                                     (0, dpad - lyr["w"].shape[1])))
                  for lyr in params["layers"]])
  bs = jnp.stack([jnp.pad(lyr["b"], ((0, 0), (0, dpad - emb_dim)))
                  for lyr in params["layers"]])
  gammas = jnp.stack([jnp.pad(lyr["gamma"], ((0, 0), (0, dpad - emb_dim)))
                      for lyr in params["layers"]])
  betas = jnp.stack([jnp.pad(lyr["beta"], ((0, 0), (0, dpad - emb_dim)))
                     for lyr in params["layers"]])

  # global_add_pool one-hot matrix (exact 0/1 -> bf16).
  p = (batch[None, :] == jnp.arange(num_graphs)[:, None]).astype(jnp.bfloat16)

  w1 = jnp.pad(params["w1"],
               ((0, dpad - emb_dim), (0, hpad - params["w1"].shape[1])))
  b1 = jnp.pad(params["b1"], ((0, 0), (0, hpad - params["b1"].shape[1])))
  w2 = jnp.pad(params["w2"],
               ((0, hpad - params["w2"].shape[0]), (0, tpad - num_tasks)))
  b2 = jnp.pad(params["b2"], ((0, 0), (0, tpad - num_tasks)))

  out = fused_gnn(a, x0, eaggs, ws, bs, gammas, betas, p, w1, b1, w2, b2,
                  add_residual=add_residual)
  return out[:, :num_tasks]


# ----------------------------------------------------------------------------
# Deterministic parameter construction
# ----------------------------------------------------------------------------
def make_params(key, num_layers, in_dim, emb_dim, num_tasks,
                num_edge_types=4, num_node_types=21):
  keys = jax.random.split(key, 4 + 3 * num_layers)
  params = {
      "node_emb": jax.random.normal(keys[0], (num_node_types, emb_dim),
                                    jnp.float32) * 0.1,
      "layers": [],
      "w1": jax.random.normal(keys[1], (emb_dim, 2 * emb_dim),
                              jnp.float32) * (1.0 / jnp.sqrt(emb_dim)),
      "b1": jnp.zeros((1, 2 * emb_dim), jnp.float32),
      "w2": jax.random.normal(keys[2], (2 * emb_dim, num_tasks),
                              jnp.float32) * (1.0 / jnp.sqrt(2 * emb_dim)),
      "b2": jnp.zeros((1, num_tasks), jnp.float32),
  }
  for i in range(num_layers):
    d_in = in_dim if i == 0 else emb_dim
    k_w, k_e, _ = keys[3 + 3 * i], keys[4 + 3 * i], keys[5 + 3 * i]
    params["layers"].append({
        "w": jax.random.normal(k_w, (d_in, emb_dim), jnp.float32)
             * (1.0 / jnp.sqrt(d_in)),
        "b": jnp.zeros((1, emb_dim), jnp.float32),
        "edge_emb": jax.random.normal(k_e, (num_edge_types, d_in),
                                      jnp.float32) * 0.1,
        "gamma": jnp.ones((1, emb_dim), jnp.float32),   # BatchNorm1d init
        "beta": jnp.zeros((1, emb_dim), jnp.float32),
    })
  return params


# ----------------------------------------------------------------------------
if __name__ == "__main__":
  NUM_LAYERS = 3
  EMB_DIM = 32
  IN_DIM = EMB_DIM          # feature_encoder emits emb_dim, so in_dim == emb_dim
  NUM_TASKS = 4
  N_NODES = 16
  N_EDGES = 32
  NUM_GRAPHS = 2

  key = jax.random.PRNGKey(0)
  k_p, k_x, k_src, k_dst, k_ea = jax.random.split(key, 5)

  params = make_params(k_p, NUM_LAYERS, IN_DIM, EMB_DIM, NUM_TASKS)

  # batched_data.x : (N, 1) integer node categories in [0, 21)
  x_idx = jax.random.randint(k_x, (N_NODES, 1), 0, 21, dtype=jnp.int32)
  # batched_data.edge_index : (2, E)
  edge_index = jnp.stack([
      jax.random.randint(k_src, (N_EDGES,), 0, N_NODES, dtype=jnp.int32),
      jax.random.randint(k_dst, (N_EDGES,), 0, N_NODES, dtype=jnp.int32),
  ])
  # batched_data.edge_attr : (E,) integer edge categories in [0, 4)
  edge_attr = jax.random.randint(k_ea, (N_EDGES,), 0, 4, dtype=jnp.int32)
  # batched_data.batch : (N,) graph assignment (first half graph 0, rest graph 1)
  batch = jnp.concatenate([
      jnp.zeros((N_NODES // 2,), jnp.int32),
      jnp.ones((N_NODES - N_NODES // 2,), jnp.int32),
  ])

  fwd = jax.jit(functools.partial(gnn_forward, num_graphs=NUM_GRAPHS,
                                  add_residual=False))
  out = fwd(params, x_idx, edge_index, edge_attr, batch)
  jax.block_until_ready(out)
  assert out.shape == (NUM_GRAPHS, NUM_TASKS)
  assert bool(jnp.all(jnp.isfinite(out)))
  print("KERNEL_OK")
</pallas_src>

<mosaic_0001>
module attributes {stable_mosaic.version = 11 : i64} {
  func.func private @main(%arg0: i32) attributes {dimension_semantics = [#tpu.dimension_semantics<core_parallel>], iteration_bounds = array<i64: 2>, tpu.core_type = #tpu.core_type<sc_scalar_subcore>, window_params = []} {
    return
  }
}

module attributes {stable_mosaic.version = 11 : i64} {
  func.func private @main(%arg0: i32) attributes {dimension_semantics = [#tpu.dimension_semantics<core_parallel>], iteration_bounds = array<i64: 2>, tpu.core_type = #tpu.core_type<sc_scalar_subcore>, window_params = []} {
    return
  }
}

module attributes {stable_mosaic.version = 11 : i64} {
  func.func @fused_gnn_kernel(%arg0: i32, %arg1: memref<16x16xbf16, #tpu.memory_space<vmem>>, %arg2: memref<16x128xf32, #tpu.memory_space<vmem>>, %arg3: memref<1x16x128xf32, #tpu.memory_space<vmem>>, %arg4: memref<1x128x128xf32, #tpu.memory_space<vmem>>, %arg5: memref<1x1x128xf32, #tpu.memory_space<vmem>>, %arg6: memref<1x1x128xf32, #tpu.memory_space<vmem>>, %arg7: memref<1x1x128xf32, #tpu.memory_space<vmem>>, %arg8: memref<2x16xbf16, #tpu.memory_space<vmem>>, %arg9: memref<128x128xf32, #tpu.memory_space<vmem>>, %arg10: memref<1x128xf32, #tpu.memory_space<vmem>>, %arg11: memref<128x128xf32, #tpu.memory_space<vmem>>, %arg12: memref<1x128xf32, #tpu.memory_space<vmem>>, %arg13: memref<2x128xf32, #tpu.memory_space<vmem>>, %arg14: memref<16x128xf32, #tpu.memory_space<vmem>>) attributes {dimension_semantics = [#tpu.dimension_semantics<arbitrary>], iteration_bounds = array<i64: 3>, scalar_prefetch = 0 : i64, scratch_operands = 1 : i64, tpu.core_type = #tpu.core_type<tc>, window_params = [{pipeline_mode = #tpu.pipeline_mode<synchronous>, transform_indices = @transform_0, window_bounds = array<i64: 16, 16>}, {pipeline_mode = #tpu.pipeline_mode<synchronous>, transform_indices = @transform_1, window_bounds = array<i64: 16, 128>}, {transform_indices = @transform_2, window_bounds = array<i64: 1, 16, 128>}, {transform_indices = @transform_3, window_bounds = array<i64: 1, 128, 128>}, {transform_indices = @transform_4, window_bounds = array<i64: 1, 1, 128>}, {transform_indices = @transform_5, window_bounds = array<i64: 1, 1, 128>}, {transform_indices = @transform_6, window_bounds = array<i64: 1, 1, 128>}, {pipeline_mode = #tpu.pipeline_mode<synchronous>, transform_indices = @transform_7, window_bounds = array<i64: 2, 16>}, {pipeline_mode = #tpu.pipeline_mode<synchronous>, transform_indices = @transform_8, window_bounds = array<i64: 128, 128>}, {pipeline_mode = #tpu.pipeline_mode<synchronous>, transform_indices = @transform_9, window_bounds = array<i64: 1, 128>}, {pipeline_mode = #tpu.pipeline_mode<synchronous>, transform_indices = @transform_10, window_bounds = array<i64: 128, 128>}, {pipeline_mode = #tpu.pipeline_mode<synchronous>, transform_indices = @transform_11, window_bounds = array<i64: 1, 128>}, {pipeline_mode = #tpu.pipeline_mode<synchronous>, transform_indices = @transform_12, window_bounds = array<i64: 2, 128>}]} {
    %c0_i32 = arith.constant 0 : i32
    %0 = arith.cmpi eq, %arg0, %c0_i32 : i32
    %1 = arith.extui %0 : i1 to i32
    %c0_i32_0 = arith.constant 0 : i32
    %2 = arith.cmpi ne, %1, %c0_i32_0 : i32
    scf.if %2 {
      %c0_30 = arith.constant 0 : index
      %c0_31 = arith.constant 0 : index
      %52 = vector.load %arg2[%c0_30, %c0_31] : memref<16x128xf32, #tpu.memory_space<vmem>>, vector<16x128xf32>
      %c0_32 = arith.constant 0 : index
      %c0_33 = arith.constant 0 : index
      %53 = vector.load %arg14[%c0_32, %c0_33] : memref<16x128xf32, #tpu.memory_space<vmem>>, vector<16x128xf32>
      tpu.vector_store %arg14[%c0_32, %c0_33], %52 {strides = array<i32>} : memref<16x128xf32, #tpu.memory_space<vmem>>, vector<16x128xf32>,
    } else {
    }
    %c0 = arith.constant 0 : index
    %c0_1 = arith.constant 0 : index
    %3 = vector.load %arg14[%c0, %c0_1] : memref<16x128xf32, #tpu.memory_space<vmem>>, vector<16x128xf32>
    %c0_2 = arith.constant 0 : index
    %c0_3 = arith.constant 0 : index
    %4 = vector.load %arg1[%c0_2, %c0_3] : memref<16x16xbf16, #tpu.memory_space<vmem>>, vector<16x16xbf16>
    %5 = arith.truncf %3 : vector<16x128xf32> to vector<16x128xbf16>
    %cst = arith.constant dense<0.000000e+00> : vector<16x128xf32>
    %6 = tpu.matmul %4, %5, %cst {dimension_numbers = #tpu.dot_dimension_numbers<[1], [0], [0], [1], [0, 0, 1, 1], [], []>} : vector<16x16xbf16>, vector<16x128xbf16>, vector<16x128xf32> -> vector<16x128xf32>
    %c0_4 = arith.constant 0 : index
    %c0_5 = arith.constant 0 : index
    %c0_6 = arith.constant 0 : index
    %7 = vector.load %arg3[%c0_4, %c0_5, %c0_6] : memref<1x16x128xf32, #tpu.memory_space<vmem>>, vector<1x16x128xf32>
    %8 = vector.shape_cast %7 : vector<1x16x128xf32> to vector<16x128xf32>
    %9 = arith.addf %6, %8 : vector<16x128xf32>
    %10 = arith.addf %9, %3 : vector<16x128xf32>
    %c0_7 = arith.constant 0 : index
    %c0_8 = arith.constant 0 : index
    %c0_9 = arith.constant 0 : index
    %11 = vector.load %arg4[%c0_7, %c0_8, %c0_9] : memref<1x128x128xf32, #tpu.memory_space<vmem>>, vector<1x128x128xf32>
    %12 = vector.shape_cast %11 : vector<1x128x128xf32> to vector<128x128xf32>
    %cst_10 = arith.constant dense<0.000000e+00> : vector<16x128xf32>
    %13 = tpu.matmul %10, %12, %cst_10 {dimension_numbers = #tpu.dot_dimension_numbers<[1], [0], [0], [1], [0, 0, 1, 1], [], []>} : vector<16x128xf32>, vector<128x128xf32>, vector<16x128xf32> -> vector<16x128xf32>
    %c0_11 = arith.constant 0 : index
    %c0_12 = arith.constant 0 : index
    %c0_13 = arith.constant 0 : index
    %14 = vector.load %arg5[%c0_11, %c0_12, %c0_13] : memref<1x1x128xf32, #tpu.memory_space<vmem>>, vector<1x1x128xf32>
    %15 = vector.shape_cast %14 : vector<1x1x128xf32> to vector<1x128xf32>
    %16 = vector.broadcast %15 : vector<1x128xf32> to vector<16x128xf32>
    %17 = arith.addf %13, %16 : vector<16x128xf32>
    %cst_14 = arith.constant dense<0.000000e+00> : vector<128xf32>
    %18 = vector.multi_reduction <add>, %17, %cst_14 [0] : vector<16x128xf32> to vector<128xf32>
    %19 = vector.shape_cast %18 : vector<128xf32> to vector<1x128xf32>
    %20 = arith.mulf %17, %17 : vector<16x128xf32>
    %cst_15 = arith.constant dense<0.000000e+00> : vector<128xf32>
    %21 = vector.multi_reduction <add>, %20, %cst_15 [0] : vector<16x128xf32> to vector<128xf32>
    %22 = vector.shape_cast %21 : vector<128xf32> to vector<1x128xf32>
    %cst_16 = arith.constant 6.250000e-02 : f32
    %23 = vector.broadcast %cst_16 : f32 to vector<1x128xf32>
    %24 = arith.mulf %19, %23 : vector<1x128xf32>
    %cst_17 = arith.constant 6.250000e-02 : f32
    %25 = vector.broadcast %cst_17 : f32 to vector<1x128xf32>
    %26 = arith.mulf %22, %25 : vector<1x128xf32>
    %27 = arith.mulf %24, %24 : vector<1x128xf32>
    %28 = arith.subf %26, %27 : vector<1x128xf32>
    %cst_18 = arith.constant 0.000000e+00 : f32
    %29 = vector.broadcast %cst_18 : f32 to vector<1x128xf32>
    %30 = arith.maximumf %28, %29 : vector<1x128xf32>
    %31 = vector.broadcast %24 : vector<1x128xf32> to vector<16x128xf32>
    %32 = arith.subf %17, %31 : vector<16x128xf32>
    %cst_19 = arith.constant 9.99999974E-6 : f32
    %33 = vector.broadcast %cst_19 : f32 to vector<1x128xf32>
    %34 = arith.addf %30, %33 : vector<1x128xf32>
    %35 = math.rsqrt %34 : vector<1x128xf32>
    %36 = vector.broadcast %35 : vector<1x128xf32> to vector<16x128xf32>
    %37 = arith.mulf %32, %36 : vector<16x128xf32>
    %c0_20 = arith.constant 0 : index
    %c0_21 = arith.constant 0 : index
    %c0_22 = arith.constant 0 : index
    %38 = vector.load %arg6[%c0_20, %c0_21, %c0_22] : memref<1x1x128xf32, #tpu.memory_space<vmem>>, vector<1x1x128xf32>
    %39 = vector.shape_cast %38 : vector<1x1x128xf32> to vector<1x128xf32>
    %40 = vector.broadcast %39 : vector<1x128xf32> to vector<16x128xf32>
    %41 = arith.mulf %40, %37 : vector<16x128xf32>
    %c0_23 = arith.constant 0 : index
    %c0_24 = arith.constant 0 : index
    %c0_25 = arith.constant 0 : index
    %42 = vector.load %arg7[%c0_23, %c0_24, %c0_25] : memref<1x1x128xf32, #tpu.memory_space<vmem>>, vector<1x1x128xf32>
    %43 = vector.shape_cast %42 : vector<1x1x128xf32> to vector<1x128xf32>
    %44 = vector.broadcast %43 : vector<1x128xf32> to vector<16x128xf32>
    %45 = arith.addf %41, %44 : vector<16x128xf32>
    %cst_26 = arith.constant 0.000000e+00 : f32
    %46 = vector.broadcast %cst_26 : f32 to vector<16x128xf32>
    %47 = arith.maximumf %45, %46 : vector<16x128xf32>
    %c0_27 = arith.constant 0 : index
    %c0_28 = arith.constant 0 : index
    %48 = vector.load %arg14[%c0_27, %c0_28] : memref<16x128xf32, #tpu.memory_space<vmem>>, vector<16x128xf32>
    tpu.vector_store %arg14[%c0_27, %c0_28], %47 {strides = array<i32>} : memref<16x128xf32, #tpu.memory_space<vmem>>, vector<16x128xf32>,
    %c2_i32 = arith.constant 2 : i32
    %49 = arith.cmpi eq, %arg0, %c2_i32 : i32
    %50 = arith.extui %49 : i1 to i32
    %c0_i32_29 = arith.constant 0 : i32
    %51 = arith.cmpi ne, %50, %c0_i32_29 : i32
    scf.if %51 {
      %c0_30 = arith.constant 0 : index
      %c0_31 = arith.constant 0 : index
      %52 = vector.load %arg8[%c0_30, %c0_31] : memref<2x16xbf16, #tpu.memory_space<vmem>>, vector<2x16xbf16>
      %53 = arith.extf %52 : vector<2x16xbf16> to vector<2x16xf32>
      %c0_32 = arith.constant 0 : index
      %c0_33 = arith.constant 0 : index
      %54 = vector.load %arg14[%c0_32, %c0_33] : memref<16x128xf32, #tpu.memory_space<vmem>>, vector<16x128xf32>
      %cst_34 = arith.constant dense<0.000000e+00> : vector<2x128xf32>
      %55 = tpu.matmul %53, %54, %cst_34 {dimension_numbers = #tpu.dot_dimension_numbers<[1], [0], [0], [1], [0, 0, 1, 1], [], []>} : vector<2x16xf32>, vector<16x128xf32>, vector<2x128xf32> -> vector<2x128xf32>
      %c0_35 = arith.constant 0 : index
      %c0_36 = arith.constant 0 : index
      %56 = vector.load %arg9[%c0_35, %c0_36] : memref<128x128xf32, #tpu.memory_space<vmem>>, vector<128x128xf32>
      %cst_37 = arith.constant dense<0.000000e+00> : vector<2x128xf32>
      %57 = tpu.matmul %55, %56, %cst_37 {dimension_numbers = #tpu.dot_dimension_numbers<[1], [0], [0], [1], [0, 0, 1, 1], [], []>} : vector<2x128xf32>, vector<128x128xf32>, vector<2x128xf32> -> vector<2x128xf32>
      %c0_38 = arith.constant 0 : index
      %c0_39 = arith.constant 0 : index
      %58 = vector.load %arg10[%c0_38, %c0_39] : memref<1x128xf32, #tpu.memory_space<vmem>>, vector<1x128xf32>
      %59 = vector.broadcast %58 : vector<1x128xf32> to vector<2x128xf32>
      %60 = arith.addf %57, %59 : vector<2x128xf32>
      %cst_40 = arith.constant 0.000000e+00 : f32
      %61 = vector.broadcast %cst_40 : f32 to vector<2x128xf32>
      %62 = arith.maximumf %60, %61 : vector<2x128xf32>
      %c0_41 = arith.constant 0 : index
      %c0_42 = arith.constant 0 : index
      %63 = vector.load %arg11[%c0_41, %c0_42] : memref<128x128xf32, #tpu.memory_space<vmem>>, vector<128x128xf32>
      %cst_43 = arith.constant dense<0.000000e+00> : vector<2x128xf32>
      %64 = tpu.matmul %62, %63, %cst_43 {dimension_numbers = #tpu.dot_dimension_numbers<[1], [0], [0], [1], [0, 0, 1, 1], [], []>} : vector<2x128xf32>, vector<128x128xf32>, vector<2x128xf32> -> vector<2x128xf32>
      %c0_44 = arith.constant 0 : index
      %c0_45 = arith.constant 0 : index
      %65 = vector.load %arg12[%c0_44, %c0_45] : memref<1x128xf32, #tpu.memory_space<vmem>>, vector<1x128xf32>
      %66 = vector.broadcast %65 : vector<1x128xf32> to vector<2x128xf32>
      %67 = arith.addf %64, %66 : vector<2x128xf32>
      %c0_46 = arith.constant 0 : index
      %c0_47 = arith.constant 0 : index
      %68 = vector.load %arg13[%c0_46, %c0_47] : memref<2x128xf32, #tpu.memory_space<vmem>>, vector<2x128xf32>
      tpu.vector_store %arg13[%c0_46, %c0_47], %67 {strides = array<i32>} : memref<2x128xf32, #tpu.memory_space<vmem>>, vector<2x128xf32>,
    } else {
    }
    return
  }
  func.func @transform_0(%arg0: i32) -> (i32, i32) {
    %c0_i32 = arith.constant 0 : i32
    %c0_i32_0 = arith.constant 0 : i32
    %c0_i32_1 = arith.constant 0 : i32
    return %c0_i32, %c0_i32_0 : i32, i32
  }
  func.func @transform_1(%arg0: i32) -> (i32, i32) {
    %c0_i32 = arith.constant 0 : i32
    %c0_i32_0 = arith.constant 0 : i32
    %c0_i32_1 = arith.constant 0 : i32
    return %c0_i32, %c0_i32_0 : i32, i32
  }
  func.func @transform_2(%arg0: i32) -> (i32, i32, i32) {
    %c0_i32 = arith.constant 0 : i32
    %c0_i32_0 = arith.constant 0 : i32
    %c0_i32_1 = arith.constant 0 : i32
    return %arg0, %c0_i32, %c0_i32_0 : i32, i32, i32
  }
  func.func @transform_3(%arg0: i32) -> (i32, i32, i32) {
    %c0_i32 = arith.constant 0 : i32
    %c0_i32_0 = arith.constant 0 : i32
    %c0_i32_1 = arith.constant 0 : i32
    return %arg0, %c0_i32, %c0_i32_0 : i32, i32, i32
  }
  func.func @transform_4(%arg0: i32) -> (i32, i32, i32) {
    %c0_i32 = arith.constant 0 : i32
    %c0_i32_0 = arith.constant 0 : i32
    %c0_i32_1 = arith.constant 0 : i32
    return %arg0, %c0_i32, %c0_i32_0 : i32, i32, i32
  }
  func.func @transform_5(%arg0: i32) -> (i32, i32, i32) {
    %c0_i32 = arith.constant 0 : i32
    %c0_i32_0 = arith.constant 0 : i32
    %c0_i32_1 = arith.constant 0 : i32
    return %arg0, %c0_i32, %c0_i32_0 : i32, i32, i32
  }
  func.func @transform_6(%arg0: i32) -> (i32, i32, i32) {
    %c0_i32 = arith.constant 0 : i32
    %c0_i32_0 = arith.constant 0 : i32
    %c0_i32_1 = arith.constant 0 : i32
    return %arg0, %c0_i32, %c0_i32_0 : i32, i32, i32
  }
  func.func @transform_7(%arg0: i32) -> (i32, i32) {
    %c0_i32 = arith.constant 0 : i32
    %c0_i32_0 = arith.constant 0 : i32
    %c0_i32_1 = arith.constant 0 : i32
    return %c0_i32, %c0_i32_0 : i32, i32
  }
  func.func @transform_8(%arg0: i32) -> (i32, i32) {
    %c0_i32 = arith.constant 0 : i32
    %c0_i32_0 = arith.constant 0 : i32
    %c0_i32_1 = arith.constant 0 : i32
    return %c0_i32, %c0_i32_0 : i32, i32
  }
  func.func @transform_9(%arg0: i32) -> (i32, i32) {
    %c0_i32 = arith.constant 0 : i32
    %c0_i32_0 = arith.constant 0 : i32
    %c0_i32_1 = arith.constant 0 : i32
    return %c0_i32, %c0_i32_0 : i32, i32
  }
  func.func @transform_10(%arg0: i32) -> (i32, i32) {
    %c0_i32 = arith.constant 0 : i32
    %c0_i32_0 = arith.constant 0 : i32
    %c0_i32_1 = arith.constant 0 : i32
    return %c0_i32, %c0_i32_0 : i32, i32
  }
  func.func @transform_11(%arg0: i32) -> (i32, i32) {
    %c0_i32 = arith.constant 0 : i32
    %c0_i32_0 = arith.constant 0 : i32
    %c0_i32_1 = arith.constant 0 : i32
    return %c0_i32, %c0_i32_0 : i32, i32
  }
  func.func @transform_12(%arg0: i32) -> (i32, i32) {
    %c0_i32 = arith.constant 0 : i32
    %c0_i32_0 = arith.constant 0 : i32
    %c0_i32_1 = arith.constant 0 : i32
    return %c0_i32, %c0_i32_0 : i32, i32
  }
}

</mosaic_0001>

<bundles_post_ra>
// kernel: gnn_forward.1
= control target key start
LH: loop header
LB: loop body
LE: loop exit
PB: predicated region body
PF: predicated region fallthrough
CT: control target
= control target key end

     0   :  { %s1680_s0 = inlined_call_operand.vmem [shape: bf16[16,16], index: 0, kind: input, shape index: {}]   ;;  %s1681_s1 = inlined_call_operand.vmem [shape: f32[16,128], index: 1, kind: input, shape index: {}]   ;;  %s1682_s2 = inlined_call_operand.vmem [shape: f32[3,16,128], index: 2, kind: input, shape index: {}]   ;;  %s1683_s3 = inlined_call_operand.vmem [shape: f32[3,128,128], index: 3, kind: input, shape index: {}]   ;;  %s1684_s4 = inlined_call_operand.vmem [shape: f32[3,1,128], index: 4, kind: input, shape index: {}]   ;;  %s1685_s5 = inlined_call_operand.vmem [shape: f32[3,1,128], index: 5, kind: input, shape index: {}]   ;;  %s1686_s6 = inlined_call_operand.vmem [shape: f32[3,1,128], index: 6, kind: input, shape index: {}]   ;;  %s1687_s7 = inlined_call_operand.vmem [shape: bf16[2,16], index: 7, kind: input, shape index: {}]   ;;  %s1688_s8 = inlined_call_operand.vmem [shape: f32[128,128], index: 8, kind: input, shape index: {}]   ;;  %s1689_s9 = inlined_call_operand.vmem [shape: f32[1,128], index: 9, kind: input, shape index: {}]   ;;  %s1690_s10 = inlined_call_operand.vmem [shape: f32[128,128], index: 10, kind: input, shape index: {}]   ;;  %s1691_s11 = inlined_call_operand.vmem [shape: f32[1,128], index: 11, kind: input, shape index: {}]   ;;  %s1692_s12 = inlined_call_operand.hbm [shape: f32[2,128], index: 12, kind: output, shape index: {}]  }
   0x1   :  { %1695 = sst [smem:[#allocation7_spill]] %s1692_s12 }
   0x2   :  { %17 = vsyncpa [#allocation4], 0  ;;  %s1445_s21 = smov 0  }
   0x3 LB: > { %1696 = sst [smem:[#allocation6_spill]] %s1372_s21  ;;  %s1451_s22 = sadd.s32 4294967295, %s1372_s21   ;;  %s1372_s21 = sphi %s1445_s21, %s23_s21  }
   0x4   : > { %p1034_p0 = scmp.ge.s32.totalorder %s1372_s21, 1  ;;  %p392_p1 = scmp.lt.s32.totalorder %s1372_s21, 4 }
   0x6   : > { %p393_p2 = pnand %p1034_p0, %p392_p1 }
   0x7   : > { %p443_p3 = scmp.lt.s32.totalorder (!%p393_p2), %s1451_s22, 2  ;;  %p1039_p4 = scmp.ne.s32.totalorder (!%p393_p2), %s1451_s22, 0 }
   0x8   : > { %396 = sbr.rel (%p393_p2) target bundleno = 1193 (0x4a9), region = 68 }
   0xf   : > { %s1457_s23 = scalar_select %p443_p3, %s1451_s22, 2 }
  0x10   : > { %466 = sbr.rel (%p1039_p4) target bundleno = 23 (0x17), region = 72  ;;  %v467_v0 = vld [vmem:[%s1681_s1] sm:$0xff] (!%p1039_p4)  ;;  %v468_v1 = vld [vmem:[%s1681_s1 + $0x8] sm:$0xff] (!%p1039_p4) }
  0x11   : > { %s1053_s24 = sshll.u32 %s1457_s23, 4  ;;  %s1054_s25 = sshll.u32 %s1457_s23, 7  ;;  %469 = vst [vmem:[#allocation2] sm:$0xff] (!%p1039_p4), %v467_v0  ;;  %470 = vst [vmem:[#allocation2 + $0x8] sm:$0xff] (!%p1039_p4), %v468_v1 }
  0x12   : > { %s1464_s28 = scalar_lea.vmem %s1682_s2, %s1053_s24  ;;  %s1469_s13 = scalar_lea.vmem %s1683_s3, %s1054_s25 }
  0x13   : > { %s455_s16 = scalar_lea.vmem %s1684_s4, %s1457_s23  ;;  %s458_s19 = scalar_lea.vmem %s1685_s5, %s1457_s23 }
  0x14   : > { %s461_s12 = scalar_lea.vmem %s1686_s6, %s1457_s23 }
  0x17 PF: > { %v1374_v4 = vmov 0.0   ;;  %vm1375_vm0 = vmmov 0   ;;  %v1333_v6 = vld [vmem:[%s1680_s0] sm:$0xff]   ;;  %v531_v8 = vld [vmem:[%s1469_s13 + $0x8] sm:$0xff]  ;;  %v532_v9 = vld [vmem:[%s1469_s13 + $0x10] sm:$0xff]  ;;  %vm483_vm1 = vcmask 130048  }
  0x18   : > { %v471_v2 = vld [vmem:[#allocation2] sm:$0xff]  ;;  %v472_v3 = vld [vmem:[#allocation2 + $0x8] sm:$0xff]  ;;  %1112 = vmatprep.subr.bf16.mxu0 %v1374_v4  ;;  %1114 = vmatprep.mubr.msk.bf16.mxu0 %vm1375_vm0, %v1374_v4  ;;  %v535_v14 = vld [vmem:[%s1469_s13 + $0x28] sm:$0xff]  ;;  %p1045_p5 = scmp.ne.s32.totalorder %s1451_s22, 2 }
  0x19   : > { %v475_v5 = vpack.c.bf16 %v472_v3, %v471_v2  ;;  %v530_v7 = vld [vmem:[%s1469_s13] sm:$0xff]  ;;  %v533_v10 = vld [vmem:[%s1469_s13 + $0x18] sm:$0xff]  ;;  %v536_v16 = vld [vmem:[%s1469_s13 + $0x30] sm:$0xff]  ;;  %vm1377_vm2 = vmmov (!%p1045_p5), 0  }
  0x1a   : > { %v1230_v11 = vpack.c.bf16 %v531_v8, %v530_v7  ;;  %v1234_v12 = vpack.c.bf16 %v533_v10, %v532_v9  ;;  %v534_v13 = vld [vmem:[%s1469_s13 + $0x20] sm:$0xff]  ;;  %v537_v17 = vld [vmem:[%s1469_s13 + $0x38] sm:$0xff]  ;;  %v539_v20 = vld [vmem:[%s1469_s13 + $0x48] sm:$0xff] }
  0x1b   : > { %1113 = vmatpush3.bf16.msra.mxu0 %v475_v5  ;;  %v1238_v15 = vpack.c.bf16 %v535_v14, %v534_v13  ;;  %v1242_v18 = vpack.c.bf16 %v537_v17, %v536_v16  ;;  %v538_v19 = vld [vmem:[%s1469_s13 + $0x40] sm:$0xff]  ;;  %v540_v22 = vld [vmem:[%s1469_s13 + $0x50] sm:$0xff]  ;;  %v541_v23 = vld [vmem:[%s1469_s13 + $0x58] sm:$0xff] }
  0x1c   : > { %1231 = vmatprep.subr.bf16.mxu1 %v1230_v11  ;;  %v1246_v21 = vpack.c.bf16 %v539_v20, %v538_v19  ;;  %v1250_v24 = vpack.c.bf16 %v541_v23, %v540_v22  ;;  %v542_v25 = vld [vmem:[%s1469_s13 + $0x60] sm:$0xff]  ;;  %v543_v26 = vld [vmem:[%s1469_s13 + $0x68] sm:$0xff]  ;;  %v544_v28 = vld [vmem:[%s1469_s13 + $0x70] sm:$0xff]  ;;  %v1376_v20 = vmov (!%p1045_p5), 0.0|0.0   ;;  %v1378_v22 = vmov (!%p1045_p5), 0.0  }
  0x1d   : > { %1233 = vmatpush3.bf16.msra.mxu1 %v1230_v11  ;;  %v1254_v27 = vpack.c.bf16 %v543_v26, %v542_v25  ;;  %v545_v29 = vld [vmem:[%s1469_s13 + $0x78] sm:$0xff]  ;;  %v476_v31 = vld [vmem:[%s1464_s28] sm:$0xff]  ;;  %v477_v33 = vld [vmem:[%s1464_s28 + $0x8] sm:$0xff]  ;;  %1262 = vmatprep.subr.bf16.mxu0 (!%p1045_p5), %v1376_v20 }
  0x1e   : > { %1115 = vmatmul.mubr.msk.bf16.vlgmr.msra.gmra.mrb[0].mxu0 %vm483_vm1, %v1333_v6  ;;  %1235 = vmatprep.subr.bf16.mxu1 %v1234_v12  ;;  %v1258_v30 = vpack.c.bf16 %v545_v29, %v544_v28  ;;  %v1042_v41 = vld [vmem:[%s455_s16] ss:$0 sm:$0xff]  ;;  %v760_v25 = vld [vmem:[%s1688_s8 + $0x10] sm:$0xff] (!%p1045_p5)  ;;  %v761_v28 = vld [vmem:[%s1688_s8 + $0x18] sm:$0xff] (!%p1045_p5) }
  0x1f   : > { %v1043_v7 = vld [vmem:[%s458_s19] ss:$0 sm:$0xff]  ;;  %1157 = vmatprep.mubr.msk.f32.mxu0 (!%p1045_p5), %vm1377_vm2, %v1378_v22  ;;  %v1269_v29 = vpack.c.bf16 (!%p1045_p5), %v761_v28, %v760_v25 }
  0x20   : > { %v1044_v10 = vld [vmem:[%s461_s12] ss:$0 sm:$0xff] }
  0x21   : > { %1237 = vmatpush3.bf16.msra.mxu1 %v1234_v12  ;;  %v758_v19 = vld [vmem:[%s1688_s8] sm:$0xff] (!%p1045_p5) }
  0x22   : > { %1239 = vmatprep.subr.bf16.mxu1 %v1238_v15  ;;  %v681_v23 = vld [vmem:[%s1687_s7] sm:$0x1] (!%p1045_p5) }
  0x23   : > { %v682_v26 = vunpack.c.l.bf16 (!%p1045_p5), %v681_v23 }
  0x25   : > { %1241 = vmatpush3.bf16.msra.mxu1 %v1238_v15 }
  0x26   : > { %1243 = vmatprep.subr.bf16.mxu1 %v1242_v18 }
  0x29   : > { %1245 = vmatpush3.bf16.msra.mxu1 %v1242_v18 }
  0x2a   : > { %1247 = vmatprep.subr.bf16.mxu1 %v1246_v21 }
  0x2d   : > { %1249 = vmatpush3.bf16.msra.mxu1 %v1246_v21 }
  0x2e   : > { %1251 = vmatprep.subr.bf16.mxu1 %v1250_v24 }
  0x31   : > { %1253 = vmatpush3.bf16.msra.mxu1 %v1250_v24  ;;  %v759_v24 = vld [vmem:[%s1688_s8 + $0x8] sm:$0xff] (!%p1045_p5) }
  0x32   : > { %1255 = vmatprep.subr.bf16.mxu1 %v1254_v27 }
  0x35   : > { %1257 = vmatpush3.bf16.msra.mxu1 %v1254_v27  ;;  %v1266_v27 = vpack.c.bf16 (!%p1045_p5), %v759_v24, %v758_v19 }
  0x36   : > { %1259 = vmatprep.subr.bf16.mxu1 %v1258_v30 }
  0x39   : > { %1261 = vmatpush3.bf16.msra.mxu1 %v1258_v30  ;;  %v762_v30 = vld [vmem:[%s1688_s8 + $0x20] sm:$0xff] (!%p1045_p5) }
  0x3a   : > { %1265 = vmatprep.subr.bf16.mxu1 (!%p1045_p5), %v1376_v20 }
  0xf1   : > { %v521_v32 = vpop.f32.mrb[0].mxu0 }
  0xf2   : > { %v522_v34 = vadd.f32 %v521_v32, %v476_v31  ;;  %v1116_v35 = vpop.f32.mrb[1].mxu0  ;;  %v763_v31 = vld [vmem:[%s1688_s8 + $0x28] sm:$0xff] (!%p1045_p5) }
  0xf3   : > { %v524_v36 = vpop.f32.mrb[2].mxu0  ;;  %v1272_v32 = vpack.c.bf16 (!%p1045_p5), %v763_v31, %v762_v30 }
  0xf4   : > { %v525_v37 = vadd.f32 %v524_v36, %v477_v33  ;;  %v1117_v38 = vpop.f32.mrb[3].mxu0  ;;  %v528_v39 = vadd.f32 %v522_v34, %v471_v2  ;;  %v764_v33 = vld [vmem:[%s1688_s8 + $0x30] sm:$0xff] (!%p1045_p5)  ;;  %v765_v34 = vld [vmem:[%s1688_s8 + $0x38] sm:$0xff] (!%p1045_p5)  ;;  %v766_v36 = vld [vmem:[%s1688_s8 + $0x40] sm:$0xff] (!%p1045_p5) }
  0xf5   : > { %v1275_v35 = vpack.c.bf16 (!%p1045_p5), %v765_v34, %v764_v33 }
  0xf6   : > { %v529_v40 = vadd.f32 %v525_v37, %v472_v3  ;;  %1150 = vmatprep.mubr.f32.mxu1 %v528_v39  ;;  %v767_v37 = vld [vmem:[%s1688_s8 + $0x48] sm:$0xff] (!%p1045_p5)  ;;  %v768_v39 = vld [vmem:[%s1688_s8 + $0x50] sm:$0xff] (!%p1045_p5) }
  0xf7   : > { %v1278_v38 = vpack.c.bf16 (!%p1045_p5), %v767_v37, %v766_v36 }
  0xf8   : > { %1151 = vmatmul.mubr.f32.vlgmr.msra.gmra.mrb[0].mxu1 %v529_v40  ;;  %v769_v40 = vld [vmem:[%s1688_s8 + $0x58] sm:$0xff] (!%p1045_p5) }
  0xf9   : > { %1192 = vmatprep.mubr.msk.f32.mxu1 (!%p1045_p5), %vm1377_vm2, %v1378_v22  ;;  %1267 = vmatpush3.bf16.msra.mxu1 (!%p1045_p5), %v1266_v27 }
  0xfa   : > { %1268 = vmatprep.subr.bf16.mxu1 (!%p1045_p5), %v1376_v20 }
  0xfd   : > { %1270 = vmatpush3.bf16.msra.mxu1 (!%p1045_p5), %v1269_v29 }
  0xfe   : > { %1271 = vmatprep.subr.bf16.mxu1 (!%p1045_p5), %v1376_v20 }
 0x101   : > { %1273 = vmatpush3.bf16.msra.mxu1 (!%p1045_p5), %v1272_v32 }
 0x102   : > { %1274 = vmatprep.subr.bf16.mxu1 (!%p1045_p5), %v1376_v20 }
 0x105   : > { %1276 = vmatpush3.bf16.msra.mxu1 (!%p1045_p5), %v1275_v35 }
 0x106   : > { %1277 = vmatprep.subr.bf16.mxu1 (!%p1045_p5), %v1376_v20 }
 0x109   : > { %1279 = vmatpush3.bf16.msra.mxu1 (!%p1045_p5), %v1278_v38 }
 0x10a   : > { %1280 = vmatprep.subr.bf16.mxu1 (!%p1045_p5), %v1376_v20 }
 0x1cb   : > { %v1152_v42 = vpop.f32.mrb[0].mxu1 }
 0x1cc   : > { %v625_v43 = vadd.f32 %v1152_v42, %v1042_v41  ;;  %v619_v44 = vpop.f32.mrb[1].mxu1  ;;  %v770_v42 = vld [vmem:[%s1688_s8 + $0x60] sm:$0xff] (!%p1045_p5) }
 0x1cd   : > { %v620_v45 = vadd.f32 %v1042_v41, %v619_v44  ;;  %v1281_v41 = vpack.c.bf16 (!%p1045_p5), %v769_v40, %v768_v39 }
 0x1ce   : > { %v636_v46 = vmul.f32 %v625_v43, %v625_v43 }
 0x1cf   : > { %v628_v47 = vadd.f32 %v625_v43, %v620_v45  ;;  %v635_v48 = vmul.f32 %v620_v45, %v620_v45  ;;  %1282 = vmatpush3.bf16.msra.mxu1 (!%p1045_p5), %v1281_v41 }
 0x1d0   : > { %1283 = vmatprep.subr.bf16.mxu1 (!%p1045_p5), %v1376_v20 }
 0x1d1   : > { %v629_v49 = vrot.slane %v628_v47, 4  ;;  %v637_v50 = vadd.f32 %v636_v46, %v635_v48  ;;  %v773_v46 = vld [vmem:[%s1688_s8 + $0x78] sm:$0xff] (!%p1045_p5)  ;;  %v852_v48 = vld [vmem:[%s1690_s10] sm:$0xff] (!%p1045_p5) }
 0x1d3   : > { %v630_v51 = vadd.f32 %v629_v49, %v628_v47  ;;  %v638_v52 = vrot.slane %v637_v50, 4  ;;  %v853_v49 = vld [vmem:[%s1690_s10 + $0x8] sm:$0xff] (!%p1045_p5) }
 0x1d5   : > { %v631_v53 = vrot.slane %v630_v51, 2  ;;  %v639_v54 = vadd.f32 %v638_v52, %v637_v50  ;;  %v854_v50 = vld [vmem:[%s1690_s10 + $0x10] sm:$0xff] (!%p1045_p5)  ;;  %v855_v52 = vld [vmem:[%s1690_s10 + $0x18] sm:$0xff] (!%p1045_p5) }
 0x1d7   : > { %v632_v55 = vadd.f32 %v631_v53, %v630_v51  ;;  %v640_v56 = vrot.slane %v639_v54, 2  ;;  %v1290_v51 = vpack.c.bf16 (!%p1045_p5), %v853_v49, %v852_v48  ;;  %v1293_v53 = vpack.c.bf16 (!%p1045_p5), %v855_v52, %v854_v50 }
 0x1d9   : > { %v633_v57 = vrot.slane %v632_v55, 1  ;;  %v641_v58 = vadd.f32 %v640_v56, %v639_v54  ;;  %v856_v54 = vld [vmem:[%s1690_s10 + $0x20] sm:$0xff] (!%p1045_p5) }
 0x1db   : > { %v634_v59 = vadd.f32 %v633_v57, %v632_v55  ;;  %v642_v60 = vrot.slane %v641_v58, 1  ;;  %v857_v55 = vld [vmem:[%s1690_s10 + $0x28] sm:$0xff] (!%p1045_p5)  ;;  %v858_v57 = vld [vmem:[%s1690_s10 + $0x30] sm:$0xff] (!%p1045_p5) }
 0x1dc   : > { %v1296_v56 = vpack.c.bf16 (!%p1045_p5), %v857_v55, %v856_v54 }
 0x1dd   : > { %v643_v61 = vadd.f32 %v642_v60, %v641_v58  ;;  %v644_v62 = vmul.f32 0.0625, %v634_v59  ;;  %v859_v58 = vld [vmem:[%s1690_s10 + $0x38] sm:$0xff] (!%p1045_p5)  ;;  %v860_v60 = vld [vmem:[%s1690_s10 + $0x40] sm:$0xff] (!%p1045_p5) }
 0x1de   : > { %v1299_v59 = vpack.c.bf16 (!%p1045_p5), %v859_v58, %v858_v57 }
 0x1df   : > { %v645_v63 = vmul.f32 0.0625, %v643_v61  ;;  %v646_v0 = vmul.f32 %v644_v62, %v644_v62  ;;  %v649_v1 = vsub.f32 %v620_v45, %v644_v62  ;;  %v650_v2 = vsub.f32 %v625_v43, %v644_v62  ;;  %v771_v43 = vld [vmem:[%s1688_s8 + $0x68] sm:$0xff] (!%p1045_p5)  ;;  %v772_v45 = vld [vmem:[%s1688_s8 + $0x70] sm:$0xff] (!%p1045_p5) }
 0x1e0   : > { %v1284_v44 = vpack.c.bf16 (!%p1045_p5), %v771_v43, %v770_v42  ;;  %v1287_v47 = vpack.c.bf16 (!%p1045_p5), %v773_v46, %v772_v45  ;;  %v861_v61 = vld [vmem:[%s1690_s10 + $0x48] sm:$0xff] (!%p1045_p5) }
 0x1e1   : > { %v647_v3 = vsub.f32 %v645_v63, %v646_v0  ;;  %v1302_v62 = vpack.c.bf16 (!%p1045_p5), %v861_v61, %v860_v60  ;;  %v862_v63 = vld [vmem:[%s1690_s10 + $0x50] sm:$0xff] (!%p1045_p5)  ;;  %v863_v0 = vld [vmem:[%s1690_s10 + $0x58] sm:$0xff] (!%p1045_p5) }
 0x1e2   : > { %1285 = vmatpush3.bf16.msra.mxu1 (!%p1045_p5), %v1284_v44 }
 0x1e3   : > { %v648_v4 = vmax.f32 %v647_v3, 0.0  ;;  %1286 = vmatprep.subr.bf16.mxu1 (!%p1045_p5), %v1376_v20  ;;  %v865_v3 = vld [vmem:[%s1690_s10 + $0x68] sm:$0xff] (!%p1045_p5) }
 0x1e5   : > { %v651_v5 = vadd.f32 1e-05, %v648_v4 }
 0x1e6   : > { %1288 = vmatpush3.bf16.msra.mxu1 (!%p1045_p5), %v1287_v47 }
 0x1e7   : > { %1334 = vrsqrt.f32 %v651_v5 }
 0x1f1   : > { %v1335_v6 = vpop.eup %1334 }
 0x1f2   : > { %v653_v8 = vmul.f32 %v1335_v6, %v649_v1  ;;  %v654_v9 = vmul.f32 %v1335_v6, %v650_v2  ;;  %v1305_v1 = vpack.c.bf16 (!%p1045_p5), %v863_v0, %v862_v63  ;;  %v864_v2 = vld [vmem:[%s1690_s10 + $0x60] sm:$0xff] (!%p1045_p5) }
 0x1f3   : > { %v1308_v4 = vpack.c.bf16 (!%p1045_p5), %v865_v3, %v864_v2 }
 0x1f4   : > { %v662_v11 = vmul.f32 %v1043_v7, %v653_v8  ;;  %v663_v12 = vmul.f32 %v1043_v7, %v654_v9  ;;  %680 = sbr.rel (%p1045_p5) target bundleno = 1162 (0x48a), region = 76  ;;  %v866_v7 = vld [vmem:[%s1690_s10 + $0x70] sm:$0xff] (!%p1045_p5)  ;;  %v867_v8 = vld [vmem:[%s1690_s10 + $0x78] sm:$0xff] (!%p1045_p5) }
 0x1f5   : > { %v1311_v9 = vpack.c.bf16 (!%p1045_p5), %v867_v8, %v866_v7 }
 0x1f6   : > { %v671_v13 = vadd.f32 %v1044_v10, %v662_v11  ;;  %v672_v14 = vadd.f32 %v1044_v10, %v663_v12  ;;  %v1047_v10 = vld [vmem:[%s1689_s9] ss:$0 sm:$0xff] (!%p1045_p5) }
 0x1f8   : > { %v673_v15 = vmax.f32 %v671_v13, 0.0  ;;  %v674_v16 = vmax.f32 %v672_v14, 0.0 }
 0x1fa   : > { %675 = vst [vmem:[#allocation2] sm:$0xff] %v673_v15  ;;  %676 = vst [vmem:[#allocation2 + $0x8] sm:$0xff] %v674_v16  ;;  %v1048_v15 = vld [vmem:[%s1691_s11] ss:$0 sm:$0xff] (!%p1045_p5) }
 0x201   : > { %v683_v17 = vld [vmem:[#allocation2] sm:$0xff]  ;;  %v684_v18 = vld [vmem:[#allocation2 + $0x8] sm:$0xff] }
 0x202   : > { %v1263_v21 = vpack.c.bf16 %v684_v18, %v683_v17 }
 0x204   : > { %1264 = vmatpush3.bf16.msra.mxu0 %v1263_v21 }
 0x205   : > { %1289 = vmatprep.subr.bf16.mxu0 %v1376_v20 }
 0x207   : > { %1158 = vmatmul.mubr.msk.f32.vlgmr.msra.gmra.mrb[0].mxu0 %vm483_vm1, %v682_v26 }
 0x208   : > { %1227 = vmatprep.mubr.msk.f32.mxu0 %vm1377_vm2, %v1378_v22  ;;  %1291 = vmatpush3.bf16.msra.mxu0 %v1290_v51 }
 0x209   : > { %1292 = vmatprep.subr.bf16.mxu0 %v1376_v20 }
 0x20c   : > { %1294 = vmatpush3.bf16.msra.mxu0 %v1293_v53 }
 0x20d   : > { %1295 = vmatprep.subr.bf16.mxu0 %v1376_v20 }
 0x210   : > { %1297 = vmatpush3.bf16.msra.mxu0 %v1296_v56 }
 0x211   : > { %1298 = vmatprep.subr.bf16.mxu0 %v1376_v20 }
 0x214   : > { %1300 = vmatpush3.bf16.msra.mxu0 %v1299_v59 }
 0x215   : > { %1301 = vmatprep.subr.bf16.mxu0 %v1376_v20 }
 0x218   : > { %1303 = vmatpush3.bf16.msra.mxu0 %v1302_v62 }
 0x219   : > { %1304 = vmatprep.subr.bf16.mxu0 %v1376_v20 }
 0x21c   : > { %1306 = vmatpush3.bf16.msra.mxu0 %v1305_v1 }
 0x21d   : > { %1307 = vmatprep.subr.bf16.mxu0 %v1376_v20 }
 0x220   : > { %1309 = vmatpush3.bf16.msra.mxu0 %v1308_v4 }
 0x221   : > { %1310 = vmatprep.subr.bf16.mxu0 %v1376_v20 }
 0x224   : > { %1312 = vmatpush3.bf16.msra.mxu0 %v1311_v9 }
 0x2da   : > { %v754_v5 = vpop.f32.mrb[0].mxu0 }
 0x2db   : > { %v1159_v6 = vpop.f32.mrb[1].mxu0  ;;  %1193 = vmatmul.mubr.f32.vlgmr.msra.gmra.mrb[0].mxu1 %v754_v5 }
 0x3ae   : > { %v847_v11 = vpop.f32.mrb[0].mxu1 }
 0x3af   : > { %v848_v12 = vadd.f32 %v1047_v10, %v847_v11  ;;  %v1194_v13 = vpop.f32.mrb[1].mxu1 }
 0x3b1   : > { %v851_v14 = vmax.f32 %v848_v12, 0.0 }
 0x3b3   : > { %1228 = vmatmul.mubr.f32.vlgmr.msra.gmra.mrb[2].mxu0 %v851_v14 }
 0x486   : > { %v941_v16 = vpop.f32.mrb[2].mxu0 }
 0x487   : > { %v942_v17 = vadd.f32 %v1048_v15, %v941_v16  ;;  %v1229_v18 = vpop.f32.mrb[3].mxu0 }
 0x489   : > { %945 = vst [vmem:[#allocation3] sm:$0x3] %v942_v17 }
 0x48a PF: > { %p1317_p6 = scmp.eq.s32.totalorder %s1451_s22, 2  ;;  %s1379_s15 = smov [#allocation3]  }
 0x48b   : > { %s953_s16 = sshll.u32 %s1379_s15, 4  ;;  %s954_s16 = int_to_ptr.vmem [resolvable:$true] %s953_s16 }
 0x48c   : > { %s1336_s17 = scalar_lea.vmem %s954_s16, 32  ;;  %p1343_p10 = scmp.lt.s32.totalorder %s954_s16, %s954_s16 }
 0x48d   : > { %p1337_p7 = scmp.ne.s32.totalorder %s954_s16, %s1336_s17  ;;  %p1344_p11 = scmp.lt.s32.totalorder %s1336_s17, %s1336_s17 }
 0x48f   : > { %p1338_p8 = pnand %p1337_p7, %p1317_p6  ;;  %p1345_p12 = por %p1344_p11, %p1343_p10 }
 0x491   : > { %p1339_p9 = pneg %p1338_p8 }
 0x493   : > { %p1346_p13 = pnand %p1345_p12, %p1339_p9 }
 0x495   : > { %1349 = shalt.err (!%p1346_p13)
}
 0x496   : > { %s1697_s23 = sld [smem:[#allocation7_spill]] }
 0x49c   : > { %s1350_s19 = scalar_lea.hbm %s1697_s23, 32 }
 0x49d   : > { %p1351_p0 = scmp.ne.s32.totalorder %s1697_s23, %s1350_s19  ;;  %p1356_p3 = scmp.lt.u32.totalorder %s1350_s19, %s1697_s23 }
 0x49f   : > { %p1352_p1 = pnand %p1351_p0, %p1317_p6 }
 0x4a1   : > { %p1353_p2 = pneg %p1352_p1 }
 0x4a3   : > { %p1358_p4 = pnand %p1356_p3, %p1353_p2 }
 0x4a5   : > { %1361 = shalt.err (!%p1358_p4)
}
 0x4a6   : > { %1314 = dma.vmem_to_hbm [thread:$0]  (%p1317_p6), %s954_s16, 32, %s1697_s23, [#allocation4]  }
 0x4a7   : > { %1367 = dma.done.wait (%p1317_p6), [#allocation4], 32  }
 0x4a8   : > { %1369 = vsyncadd (%p1317_p6), [#allocation4], 4294967264 }
 0x4a9 PF: > { %s1698_s29 = sld [smem:[#allocation6_spill]] }
 0x4af   : > { %s23_s21 = sadd.s32 1, %s1698_s29  }
 0x4b0   : > { %p20_p5 = scmp.ge.s32.totalorder %s23_s21, 5  }
 0x4b2   :  { %22 = sbr.rel (!%p20_p5) target bundleno = 3 (0x3), region = 115 }
 0x4b9   :  { %966 = vsyncpa [#allocation4], 1 }
 0x4ba   :  { %968 = vsyncpa [#allocation4 + $0x1], 1 }

</bundles_post_ra>
